<compile_context>
chip_gen: v7x
topology: tpu7x:2x2x1
jax: 0.10.0
libtpu: 0.0.40
codegen_flags: <defaults>
</compile_context>

<pallas_src>
import jax
import jax.numpy as jnp
from jax import lax
from jax.experimental import pallas as pl
from jax.experimental.pallas import tpu as pltpu

_LANE = 128
_SUBLANE = 8


def _round_up(x, m):
    return ((x + m - 1) // m) * m


def _vmem_capacity_bytes():
    try:
        return int(pltpu.get_tpu_info().vmem_capacity_bytes)
    except Exception:
        return 64 * 1024 * 1024   # conservative: v7x physical VMEM


def _default_block_budget():
    # 2 inputs x 2 pipeline buffers x budget must sit comfortably inside the
    # scoped VMEM window on every generation: 4 MiB on v7x (64 MiB physical),
    # 8 MiB on v5e/v6e (128 MiB physical).
    cap = _vmem_capacity_bytes()
    return max(1 * 1024 * 1024, min(8 * 1024 * 1024, cap // 16))


def _pick_block(total, target, step):
    """Block size along one axis.

    Prefer a step-aligned divisor of `total` (no tail masking) within 2x of
    `target`; otherwise return `target` itself and request a masked tail
    block (cdiv grid)."""
    if total <= target:
        return total, False
    target = max(step, (target // step) * step)
    best = 0
    b = step
    while b <= target:
        if total % b == 0:
            best = b
        b += step
    if best * 2 >= target:
        return best, False
    return target, True


def _tile_sum(mask):
    """(bn, th, W) bool -> scalar f32.  Sublane + batch reductions stay on
    the VPU; a single cross-lane pass finishes the tile."""
    x = mask.astype(jnp.float32)
    lane = jnp.sum(jnp.sum(x, axis=1, keepdims=True), axis=0, keepdims=True)
    return jnp.sum(lane)


def _make_kernel(*, n, h, bn, th, w, mask_n, mask_h):
    def kernel(pred_ref, gt_ref, out_ref):
        # DMA ships the native dtype; upcast per tile on the VPU.
        p = pred_ref[...].astype(jnp.float32)
        g = gt_ref[...].astype(jnp.float32)

        t_p = p > 0.5
        t_g = g > 0.5
        m_i = jnp.logical_and(t_p, t_g)   # intersection mask (IoU #1)
        m_u = jnp.logical_or(t_p, t_g)    # union mask (IoU #1)

        # Statically-gated tail masking: out-of-range rows / images of ragged
        # tail blocks hold unspecified VMEM data and must not be counted.
        if mask_n or mask_h:
            valid = None
            if mask_n:
                rem = n - pl.program_id(0) * bn
                idx = lax.broadcasted_iota(jnp.int32, (bn, th, w), 0)
                valid = idx < rem
            if mask_h:
                rem = h - pl.program_id(1) * th
                idx = lax.broadcasted_iota(jnp.int32, (bn, th, w), 1)
                vh = idx < rem
                valid = vh if valid is None else jnp.logical_and(valid, vh)
            m_i = jnp.logical_and(m_i, valid)
            m_u = jnp.logical_and(m_u, valid)

        i_s = _tile_sum(m_i)
        u_s = _tile_sum(m_u)

        # Lane-dense (1, 1, 2, 128) partial-sum record for this grid step.
        out_ref[...] = jnp.concatenate(
            [jnp.full((1, 1, 1, _LANE), i_s, jnp.float32),
             jnp.full((1, 1, 1, _LANE), u_s, jnp.float32)], axis=2)

    return kernel


def optuna_loss(char_fg_pred, char_fg_gt, weight=0.5, block_budget_bytes=None):
    """Pallas-TPU implementation of OptunaLoss.forward for [N, C, H, W]."""
    assert char_fg_pred.shape == char_fg_gt.shape
    n, _, h, w = char_fg_pred.shape
    elem = jnp.dtype(char_fg_pred.dtype).itemsize
    budget = (_default_block_budget()
              if block_budget_bytes is None else int(block_budget_bytes))

    row_bytes = _round_up(w, _LANE) * elem
    img_bytes = _round_up(h, _SUBLANE) * row_bytes

    mask_n = mask_h = False
    if n * img_bytes <= budget:
        # Whole channel-0 slab in one block: single grid step.
        bn, th = n, h
    elif img_bytes <= budget:
        # Group whole images per block.
        bn, mask_n = _pick_block(n, budget // img_bytes, 1)
        th = h
    else:
        # Per-image row-band streaming.
        bn = 1
        max_rows = max(_SUBLANE, (budget // row_bytes) // _SUBLANE * _SUBLANE)
        th, mask_h = _pick_block(h, max_rows, _SUBLANE)

    grid = (pl.cdiv(n, bn), pl.cdiv(h, th))
    block_bytes = bn * _round_up(th, _SUBLANE) * row_bytes
    # 2 inputs x 2 pipeline buffers + output blocks / slack; safe on v7x's
    # 64 MiB physical VMEM because block_bytes is bounded by the budget.
    vmem_limit = int(min(60 * 1024 * 1024,
                         max(24 * 1024 * 1024,
                             4 * block_bytes + 6 * 1024 * 1024)))

    tile_spec = pl.BlockSpec((bn, None, th, w), lambda i, j: (i, 0, j, 0))
    out_spec = pl.BlockSpec((1, 1, 2, _LANE), lambda i, j: (i, j, 0, 0))

    kernel = _make_kernel(n=n, h=h, bn=bn, th=th, w=w,
                          mask_n=mask_n, mask_h=mask_h)

    partials = pl.pallas_call(
        kernel,
        out_shape=jax.ShapeDtypeStruct((grid[0], grid[1], 2, _LANE),
                                       jnp.float32),
        grid_spec=pltpu.PrefetchScalarGridSpec(
            num_scalar_prefetch=0,
            grid=grid,
            in_specs=[tile_spec, tile_spec],
            out_specs=out_spec,
        ),
        compiler_params=pltpu.CompilerParams(
            # No cross-step carried state -> fully parallel grid; v7x megacore
            # shards it across both TensorCores, no-op on v5e/v6e.
            dimension_semantics=("parallel", "parallel"),
            vmem_limit_bytes=vmem_limit,
        ),
        cost_estimate=pl.CostEstimate(
            flops=int(10 * n * h * w),
            transcendentals=0,
            bytes_accessed=int(2 * n * h * w * elem
                               + grid[0] * grid[1] * 2 * _LANE * 4),
        ),
    )(char_fg_pred, char_fg_gt)

    # Cross-step reduction + IoU math: O(grid) work, done in XLA so the kernel
    # never recompiles when an Optuna trial changes the weight.
    i1 = jnp.sum(partials[:, :, 0, 0])
    u1 = jnp.sum(partials[:, :, 1, 0])
    total = jnp.float32(n * h * w)
    # Complement identity: (1-x) > 0.5 <=> not (x > 0.5) (exact except for
    # elements exactly equal to 0.5 / its float rounding boundary).
    i2 = total - u1
    u2 = total - i1

    loss1 = 1.0 - (i1 + 0.0001) / (u1 + 0.0001)
    loss2 = 1.0 - (i2 + 0.0001) / (u2 + 0.0001)
    wgt = jnp.float32(weight)
    return wgt * loss1 + (1.0 - wgt) * loss2


if __name__ == "__main__":
    key = jax.random.PRNGKey(0)
    k1, k2, k3, k4, k5, k6 = jax.random.split(key, 6)

    # Pure-JAX reference with the exact torch-module semantics.
    def _iou_ref(p, g):
        pb = (p > 0.5).astype(jnp.float32)
        gb = (g > 0.5).astype(jnp.float32)
        i = jnp.sum(pb * gb)
        u = jnp.sum(pb) + jnp.sum(gb) - i
        return 1.0 - (i + 0.0001) / (u + 0.0001)

    def _ref(p4, g4, wgt):
        return (wgt * _iou_ref(p4[:, 0], g4[:, 0])
                + (1.0 - wgt) * _iou_ref(1 - p4[:, 0], 1 - g4[:, 0]))

    # Case 1: small [N, C, H, W] -> single-block fast path, grid (1, 1).
    pred = jax.random.uniform(k1, (2, 4, 16, 16), dtype=jnp.float32)
    gt = (jax.random.uniform(k2, (2, 4, 16, 16), dtype=jnp.float32) > 0.5
          ).astype(jnp.float32)
    out1 = jax.block_until_ready(optuna_loss(pred, gt, weight=0.5))
    assert jnp.allclose(out1, _ref(pred, gt, 0.5), atol=1e-5), out1

    # Case 2: tiny budget forces the streaming path, grid (2, 2), no masks.
    out2 = jax.block_until_ready(
        optuna_loss(pred, gt, weight=0.3, block_budget_bytes=4096))
    assert jnp.allclose(out2, _ref(pred, gt, 0.3), atol=1e-5), out2

    # Case 3: H = 20 (not a multiple of 8) + tiny budget -> masked row tail.
    pred3 = jax.random.uniform(k3, (2, 3, 20, 16), dtype=jnp.float32)
    gt3 = (jax.random.uniform(k4, (2, 3, 20, 16), dtype=jnp.float32) > 0.5
           ).astype(jnp.float32)
    out3 = jax.block_until_ready(
        optuna_loss(pred3, gt3, weight=0.7, block_budget_bytes=4096))
    assert jnp.allclose(out3, _ref(pred3, gt3, 0.7), atol=1e-5), out3

    # Case 4: N = 5 grouped into blocks of 4 images -> masked batch tail.
    pred4 = jax.random.uniform(k5, (5, 3, 20, 16), dtype=jnp.float32)
    gt4 = (jax.random.uniform(k6, (5, 3, 20, 16), dtype=jnp.float32) > 0.5
           ).astype(jnp.float32)
    out4 = jax.block_until_ready(
        optuna_loss(pred4, gt4, weight=0.4, block_budget_bytes=50000))
    assert jnp.allclose(out4, _ref(pred4, gt4, 0.4), atol=1e-5), out4

    print("KERNEL_OK")
</pallas_src>

<mosaic_0001>
module attributes {stable_mosaic.version = 11 : i64} {
  func.func @kernel(%arg0: i32, %arg1: i32, %arg2: memref<2x1x16x16xf32, #tpu.memory_space<vmem>>, %arg3: memref<2x1x16x16xf32, #tpu.memory_space<vmem>>, %arg4: memref<1x1x2x128xf32, #tpu.memory_space<vmem>>) attributes {dimension_semantics = [#tpu.dimension_semantics<parallel>, #tpu.dimension_semantics<parallel>], iteration_bounds = array<i64: 1, 1>, scalar_prefetch = 0 : i64, scratch_operands = 0 : i64, tpu.core_type = #tpu.core_type<tc>, window_params = [{transform_indices = @transform_0, window_bounds = array<i64: 2, 1, 16, 16>}, {transform_indices = @transform_1, window_bounds = array<i64: 2, 1, 16, 16>}, {transform_indices = @transform_2, window_bounds = array<i64: 1, 1, 2, 128>}]} {
    %c0 = arith.constant 0 : index
    %c0_0 = arith.constant 0 : index
    %c0_1 = arith.constant 0 : index
    %c0_2 = arith.constant 0 : index
    %0 = vector.load %arg2[%c0, %c0_0, %c0_1, %c0_2] : memref<2x1x16x16xf32, #tpu.memory_space<vmem>>, vector<2x1x16x16xf32>
    %1 = vector.shape_cast %0 : vector<2x1x16x16xf32> to vector<2x16x16xf32>
    %c0_3 = arith.constant 0 : index
    %c0_4 = arith.constant 0 : index
    %c0_5 = arith.constant 0 : index
    %c0_6 = arith.constant 0 : index
    %2 = vector.load %arg3[%c0_3, %c0_4, %c0_5, %c0_6] : memref<2x1x16x16xf32, #tpu.memory_space<vmem>>, vector<2x1x16x16xf32>
    %3 = vector.shape_cast %2 : vector<2x1x16x16xf32> to vector<2x16x16xf32>
    %cst = arith.constant 5.000000e-01 : f32
    %4 = vector.broadcast %cst : f32 to vector<2x16x16xf32>
    %5 = arith.cmpf ogt, %1, %4 : vector<2x16x16xf32>
    %cst_7 = arith.constant 5.000000e-01 : f32
    %6 = vector.broadcast %cst_7 : f32 to vector<2x16x16xf32>
    %7 = arith.cmpf ogt, %3, %6 : vector<2x16x16xf32>
    %8 = arith.andi %5, %7 : vector<2x16x16xi1>
    %9 = arith.ori %5, %7 : vector<2x16x16xi1>
    %10 = arith.extui %8 : vector<2x16x16xi1> to vector<2x16x16xi32>
    %11 = arith.sitofp %10 : vector<2x16x16xi32> to vector<2x16x16xf32>
    %cst_8 = arith.constant dense<0.000000e+00> : vector<2x16xf32>
    %12 = vector.multi_reduction <add>, %11, %cst_8 [1] : vector<2x16x16xf32> to vector<2x16xf32>
    %13 = vector.shape_cast %12 : vector<2x16xf32> to vector<2x1x16xf32>
    %cst_9 = arith.constant dense<0.000000e+00> : vector<1x16xf32>
    %14 = vector.multi_reduction <add>, %13, %cst_9 [0] : vector<2x1x16xf32> to vector<1x16xf32>
    %15 = vector.shape_cast %14 : vector<1x16xf32> to vector<1x1x16xf32>
    %16 = vector.shape_cast %15 : vector<1x1x16xf32> to vector<1x1x1x16xf32>
    %cst_10 = arith.constant dense<0.000000e+00> : vector<1xf32>
    %17 = vector.multi_reduction <add>, %16, %cst_10 [1, 2, 3] : vector<1x1x1x16xf32> to vector<1xf32>
    %18 = vector.shape_cast %17 : vector<1xf32> to vector<1x1x1x1xf32>
    %19 = vector.extract %18[0, 0, 0, 0] : f32 from vector<1x1x1x1xf32>
    %20 = arith.extui %9 : vector<2x16x16xi1> to vector<2x16x16xi32>
    %21 = arith.sitofp %20 : vector<2x16x16xi32> to vector<2x16x16xf32>
    %cst_11 = arith.constant dense<0.000000e+00> : vector<2x16xf32>
    %22 = vector.multi_reduction <add>, %21, %cst_11 [1] : vector<2x16x16xf32> to vector<2x16xf32>
    %23 = vector.shape_cast %22 : vector<2x16xf32> to vector<2x1x16xf32>
    %cst_12 = arith.constant dense<0.000000e+00> : vector<1x16xf32>
    %24 = vector.multi_reduction <add>, %23, %cst_12 [0] : vector<2x1x16xf32> to vector<1x16xf32>
    %25 = vector.shape_cast %24 : vector<1x16xf32> to vector<1x1x16xf32>
    %26 = vector.shape_cast %25 : vector<1x1x16xf32> to vector<1x1x1x16xf32>
    %cst_13 = arith.constant dense<0.000000e+00> : vector<1xf32>
    %27 = vector.multi_reduction <add>, %26, %cst_13 [1, 2, 3] : vector<1x1x1x16xf32> to vector<1xf32>
    %28 = vector.shape_cast %27 : vector<1xf32> to vector<1x1x1x1xf32>
    %29 = vector.extract %28[0, 0, 0, 0] : f32 from vector<1x1x1x1xf32>
    %30 = vector.broadcast %19 : f32 to vector<1x1x1x128xf32>
    %31 = vector.broadcast %29 : f32 to vector<1x1x1x128xf32>
    %32 = tpu.concatenate %30, %31 in 2 : vector<1x1x1x128xf32>, vector<1x1x1x128xf32> -> vector<1x1x2x128xf32>
    %c0_14 = arith.constant 0 : index
    %c0_15 = arith.constant 0 : index
    %c0_16 = arith.constant 0 : index
    %c0_17 = arith.constant 0 : index
    %33 = vector.load %arg4[%c0_14, %c0_15, %c0_16, %c0_17] : memref<1x1x2x128xf32, #tpu.memory_space<vmem>>, vector<1x1x2x128xf32>
    tpu.vector_store %arg4[%c0_14, %c0_15, %c0_16, %c0_17], %32 {strides = array<i32>} : memref<1x1x2x128xf32, #tpu.memory_space<vmem>>, vector<1x1x2x128xf32>,
    return
  }
  func.func @transform_0(%arg0: i32, %arg1: i32) -> (i32, i32, i32, i32) {
    %c0_i32 = arith.constant 0 : i32
    %c0_i32_0 = arith.constant 0 : i32
    %c0_i32_1 = arith.constant 0 : i32
    return %arg0, %c0_i32, %arg1, %c0_i32_0 : i32, i32, i32, i32
  }
  func.func @transform_1(%arg0: i32, %arg1: i32) -> (i32, i32, i32, i32) {
    %c0_i32 = arith.constant 0 : i32
    %c0_i32_0 = arith.constant 0 : i32
    %c0_i32_1 = arith.constant 0 : i32
    return %arg0, %c0_i32, %arg1, %c0_i32_0 : i32, i32, i32, i32
  }
  func.func @transform_2(%arg0: i32, %arg1: i32) -> (i32, i32, i32, i32) {
    %c0_i32 = arith.constant 0 : i32
    %c0_i32_0 = arith.constant 0 : i32
    %c0_i32_1 = arith.constant 0 : i32
    return %arg0, %arg1, %c0_i32, %c0_i32_0 : i32, i32, i32, i32
  }
}

</mosaic_0001>

<bundles_post_ra>
// kernel: tpu_custom_call.1
= control target key start
LH: loop header
LB: loop body
LE: loop exit
PB: predicated region body
PF: predicated region fallthrough
CT: control target
= control target key end

     0   :  { %7 = vsyncpa [#allocation3], 0  ;;  %s356_s0 = inlined_call_operand.hbm [shape: f32[2,4,16,16], index: 0, kind: input, shape index: {}]   ;;  %s357_s1 = inlined_call_operand.hbm [shape: f32[2,4,16,16], index: 1, kind: input, shape index: {}]   ;;  %s358_s2 = inlined_call_operand.hbm [shape: f32[1,1,2,128], index: 2, kind: output, shape index: {}]  }
   0x1   :  { %8 = vsyncpa [#allocation6], 0 }
   0x2   :  { %9 = vsyncpa [#allocation4], 0 }
   0x3   :  { %s19_s9 = sld [smem:[#allocation0]]   ;;  %s277_s10 = smov [#allocation2]  }
   0x4   :  { %s27_s11 = sshll.u32 %s277_s10, 4  ;;  %s278_s12 = smov 1024   ;;  %s28_s11 = int_to_ptr.vmem [resolvable:$true] %s27_s11 }
   0x5   :  { %34 = sst [smem:[#allocation9]] %s278_s12  ;;  %s279_s13 = smov 256  }
   0x6   :  { %36 = sst [smem:[#allocation9 + $0x1]] %s279_s13  ;;  %s280_s14 = smov 2  }
   0x7   :  { %38 = sst [smem:[#allocation9 + $0x2]] %s280_s14  ;;  %s281_s16 = smov 128  }
   0x8   :  { %40 = sst [smem:[#allocation9 + $0x3]] %s281_s16  ;;  %s282_s18 = smov 8  }
   0x9   :  { %s215_s15 = sshll.u32 %s19_s9, 26  ;;  %42 = sst [smem:[#allocation9 + $0x4]] %s281_s16 }
   0xa   :  { %s216_s17 = sadd.s32 134217728, %s215_s15  ;;  %44 = sst [smem:[#allocation9 + $0x5]] %s282_s18 }
   0xb   :  { %s283_s19 = smov [#allocation3]   ;;  %s284_s20 = smov [#allocation8]  }
   0xc   :  { %46 = dma.general %s356_s0, 512, %s28_s11, %s283_s19, %s284_s20, [#allocation9], %s216_s17, 0  }
   0xd   :  { %s56_s23 = sld [smem:[#allocation0]]   ;;  %s285_s24 = smov [#allocation5]  }
   0xe   :  { %s64_s25 = sshll.u32 %s285_s24, 4  ;;  %s286_s26 = smov 1024   ;;  %s65_s25 = int_to_ptr.vmem [resolvable:$true] %s64_s25 }
   0xf   :  { %71 = sst [smem:[#allocation11]] %s286_s26  ;;  %s287_s27 = smov 256  }
  0x10   :  { %73 = sst [smem:[#allocation11 + $0x1]] %s287_s27  ;;  %s288_s28 = smov 2  }
  0x11   :  { %75 = sst [smem:[#allocation11 + $0x2]] %s288_s28  ;;  %s289_s30 = smov 128  }
  0x12   :  { %77 = sst [smem:[#allocation11 + $0x3]] %s289_s30  ;;  %s290_s4 = smov 8  }
  0x13   :  { %s217_s29 = sshll.u32 %s56_s23, 26  ;;  %79 = sst [smem:[#allocation11 + $0x4]] %s289_s30 }
  0x14   :  { %s218_s3 = sadd.s32 134217728, %s217_s29  ;;  %81 = sst [smem:[#allocation11 + $0x5]] %s290_s4 }
  0x15   :  { %s291_s5 = smov [#allocation6]   ;;  %s292_s6 = smov [#allocation10]  }
  0x16   :  { %83 = dma.general %s357_s1, 512, %s65_s25, %s291_s5, %s292_s6, [#allocation11], %s218_s3, 0  }
  0x17   :  { %271 = dma.done.wait [#allocation3], 512  }
  0x18   :  { %272 = vsyncadd [#allocation3], 4294966784 }
  0x19   :  { %273 = dma.done.wait [#allocation6], 512  }
  0x1a   :  { %274 = vsyncadd [#allocation6], 4294966784  ;;  %v90_v0 = vld [vmem:[#allocation2] sm:$0xff]  ;;  %v91_v1 = vld [vmem:[#allocation2 + $0x8] sm:$0xff]  ;;  %vm122_vm5 = vcmask 130048   ;;  %v293_v8 = vmov 0.0  }
  0x1b   :  { %v92_v2 = vld [vmem:[#allocation2 + $0x10] sm:$0xff]  ;;  %v93_v3 = vld [vmem:[#allocation2 + $0x18] sm:$0xff]  ;;  %v94_v4 = vld [vmem:[#allocation5] sm:$0xff]  ;;  %vm98_vm0 = vcmp.gt.f32.partialorder %v90_v0, 0.5  ;;  %vm99_vm1 = vcmp.gt.f32.partialorder %v91_v1, 0.5  ;;  %s294_s8 = smov [#allocation7]  }
  0x1c   :  { %v95_v5 = vld [vmem:[#allocation5 + $0x8] sm:$0xff]  ;;  %v96_v6 = vld [vmem:[#allocation5 + $0x10] sm:$0xff]  ;;  %v97_v7 = vld [vmem:[#allocation5 + $0x18] sm:$0xff]  ;;  %vm100_vm2 = vcmp.gt.f32.partialorder %v92_v2, 0.5  ;;  %vm102_vm3 = vcmp.gt.f32.partialorder %v94_v4, 0.5  ;;  %vm101_vm6 = vcmp.gt.f32.partialorder %v93_v3, 0.5 }
  0x1d   :  { %vm103_vm4 = vcmp.gt.f32.partialorder %v95_v5, 0.5  ;;  %vm104_vm7 = vcmp.gt.f32.partialorder %v96_v6, 0.5  ;;  %vm105_vm8 = vcmp.gt.f32.partialorder %v97_v7, 0.5  ;;  %vm106_vm9 = vmand %vm98_vm0, %vm102_vm3  ;;  %s205_s9 = sshll.u32 %s294_s8, 4  ;;  %s206_s9 = int_to_ptr.vmem [resolvable:$true] %s205_s9 }
  0x1e   :  { %vm107_vm10 = vmand %vm99_vm1, %vm103_vm4  ;;  %v219_v9 = vsel %vm106_vm9, 1.0, %v293_v8  ;;  %s249_s11 = scalar_lea.vmem %s206_s9, 32  ;;  %p254_p1 = scmp.lt.s32.totalorder %s206_s9, %s206_s9 }
  0x1f   :  { %vm108_vm11 = vmand %vm100_vm2, %vm104_vm7  ;;  %v220_v10 = vsel %vm107_vm10, 1.0, %v293_v8  ;;  %v123_v11 = vsel %vm122_vm5, %v219_v9, 0.0  ;;  %p250_p0 = scmp.ne.s32.totalorder %s206_s9, %s249_s11  ;;  %p255_p2 = scmp.lt.s32.totalorder %s249_s11, %s249_s11 }
  0x20   :  { %vm109_vm12 = vmand %vm101_vm6, %vm105_vm8  ;;  %v221_v12 = vsel %vm108_vm11, 1.0, %v293_v8  ;;  %v124_v13 = vsel %vm122_vm5, %v220_v10, 0.0 }
  0x21   :  { %v222_v14 = vsel %vm109_vm12, 1.0, %v293_v8  ;;  %v125_v15 = vadd.f32 %v124_v13, %v123_v11  ;;  %v132_v16 = vsel %vm122_vm5, %v221_v12, 0.0  ;;  %vm110_vm13 = vmor %vm98_vm0, %vm102_vm3  ;;  %vm144_vm0 = vcmask 122880   ;;  %p256_p3 = por %p255_p2, %p254_p1 }
  0x22   :  { %v133_v17 = vsel %vm122_vm5, %v222_v14, 0.0  ;;  %vm111_vm14 = vmor %vm99_vm1, %vm103_vm4  ;;  %v223_v18 = vsel %vm110_vm13, 1.0, %v293_v8  ;;  %vm196_vm1 = vcmask 1040384  }
  0x23   :  { %v126_v19 = vrot.slane %v125_v15, 4  ;;  %v134_v20 = vadd.f32 %v133_v17, %v132_v16  ;;  %vm112_vm15 = vmor %vm100_vm2, %vm104_vm7  ;;  %v224_v21 = vsel %vm111_vm14, 1.0, %v293_v8  ;;  %v163_v22 = vsel %vm122_vm5, %v223_v18, 0.0  ;;  %p257_p4 = pnand %p256_p3, %p250_p0 }
  0x24   :  { %vm113_vm9 = vmor %vm101_vm6, %vm105_vm8  ;;  %v225_v23 = vsel %vm112_vm15, 1.0, %v293_v8  ;;  %v164_v24 = vsel %vm122_vm5, %v224_v21, 0.0 }
  0x25   :  { %v127_v25 = vadd.f32 %v126_v19, %v125_v15  ;;  %v135_v26 = vrot.slane %v134_v20, 4  ;;  %v226_v27 = vsel %vm113_vm9, 1.0, %v293_v8  ;;  %v165_v28 = vadd.f32 %v164_v24, %v163_v22 }
  0x26   :  { %v172_v29 = vsel %vm122_vm5, %v225_v23, 0.0  ;;  %v173_v30 = vsel %vm122_vm5, %v226_v27, 0.0 }
  0x27   :  { %v128_v31 = vrot.slane %v127_v25, 2  ;;  %v136_v32 = vadd.f32 %v135_v26, %v134_v20  ;;  %v166_v33 = vrot.slane %v165_v28, 4  ;;  %v174_v34 = vadd.f32 %v173_v30, %v172_v29 }
  0x29   :  { %v129_v35 = vadd.f32 %v128_v31, %v127_v25  ;;  %v137_v36 = vrot.slane %v136_v32, 2  ;;  %v167_v37 = vadd.f32 %v166_v33, %v165_v28  ;;  %v175_v38 = vrot.slane %v174_v34, 4 }
  0x2b   :  { %v130_v39 = vrot.slane %v129_v35, 1  ;;  %v138_v40 = vadd.f32 %v137_v36, %v136_v32  ;;  %v168_v41 = vrot.slane %v167_v37, 2  ;;  %v176_v42 = vadd.f32 %v175_v38, %v174_v34 }
  0x2d   :  { %v131_v43 = vadd.f32 %v130_v39, %v129_v35  ;;  %v139_v44 = vrot.slane %v138_v40, 1  ;;  %v169_v45 = vadd.f32 %v168_v41, %v167_v37  ;;  %v177_v46 = vrot.slane %v176_v42, 2 }
  0x2f   :  { %v140_v47 = vadd.f32 %v139_v44, %v138_v40  ;;  %v141_v48 = vsel %vm122_vm5, %v131_v43, 0.0  ;;  %v170_v49 = vrot.slane %v169_v45, 1  ;;  %v178_v50 = vadd.f32 %v177_v46, %v176_v42 }
  0x31   :  { %v142_v51 = vsel %vm122_vm5, %v140_v47, 0.0  ;;  %v171_v52 = vadd.f32 %v170_v49, %v169_v45  ;;  %v179_v53 = vrot.slane %v178_v50, 1 }
  0x32   :  { %v143_v54 = vadd.f32 %v142_v51, %v141_v48 }
  0x33   :  { %v180_v55 = vadd.f32 %v179_v53, %v178_v50  ;;  %v181_v56 = vsel %vm122_vm5, %v171_v52, 0.0 }
  0x34   :  { %v145_v57 = vsel %vm144_vm0, %v143_v54, 0.0 }
  0x35   :  { %146 = vadd.xlane.f32.xlu0 %v145_v57  ;;  %v182_v58 = vsel %vm122_vm5, %v180_v55, 0.0 }
  0x36   :  { %v183_v59 = vadd.f32 %v182_v58, %v181_v56 }
  0x38   :  { %v184_v60 = vsel %vm144_vm0, %v183_v59, 0.0 }
  0x39   :  { %185 = vadd.xlane.f32.xlu0 %v184_v60 }
  0xc2   :  { %v147_v61 = vpop.xlane.xlu0 %146 }
  0xc3   :  { %v148_v62 = vrot.slane %v147_v61, 4 }
  0xc5   :  { %v149_v63 = vadd.f32 %v148_v62, %v147_v61 }
  0xc6   :  { %v186_v0 = vpop.xlane.xlu0 %185 }
  0xc7   :  { %v150_v1 = vrot.slane %v149_v63, 2  ;;  %v187_v2 = vrot.slane %v186_v0, 4 }
  0xc9   :  { %v188_v3 = vadd.f32 %v187_v2, %v186_v0  ;;  %v151_v4 = vadd.f32 %v150_v1, %v149_v63 }
  0xcb   :  { %v189_v5 = vrot.slane %v188_v3, 2  ;;  %v152_v6 = vrot.slane %v151_v4, 1 }
  0xcd   :  { %v190_v7 = vadd.f32 %v189_v5, %v188_v3  ;;  %v153_v8 = vadd.f32 %v152_v6, %v151_v4 }
  0xcf   :  { %227 = vpush %v153_v8  ;;  %v191_v9 = vrot.slane %v190_v7, 1 }
  0xd1   :  { %v192_v10 = vadd.f32 %v191_v9, %v190_v7 }
  0xd3   :  { %229 = vpush %v192_v10 }
 0x100   :  { %s228_s1 = spop %227 }
 0x101   :  { %v194_v11 = vstv %s228_s1 }
 0x104   :  { %s230_s10 = spop %229 }
 0x105   :  { %v195_v12 = vstv %s230_s10 }
 0x106   :  { %v197_v13 = vsel %vm196_vm1, %v194_v11, %v195_v12 }
 0x107   :  { %198 = vst [vmem:[#allocation7] sm:$0x3] %v197_v13 }
 0x108   :  { %260 = shalt.err (!%p257_p4)
}
 0x109   :  { %s261_s14 = scalar_lea.hbm %s358_s2, 32 }
 0x10a   :  { %p262_p5 = scmp.ne.s32.totalorder %s358_s2, %s261_s14  ;;  %p265_p6 = scmp.lt.u32.totalorder %s261_s14, %s358_s2 }
 0x10c   :  { %p267_p7 = pnand %p265_p6, %p262_p5 }
 0x10e   :  { %270 = shalt.err (!%p267_p7)
}
 0x10f   :  { %208 = dma.vmem_to_hbm [thread:$0]  %s206_s9, 32, %s358_s2, [#allocation4]  }
 0x110   :  { %275 = dma.done.wait [#allocation4], 32  }
 0x111   :  { %276 = vsyncadd [#allocation4], 4294967264 }
 0x112   :  { %212 = vsyncpa [#allocation3], 1 }
 0x113   :  { %213 = vsyncpa [#allocation6], 1 }
 0x114   :  { %214 = vsyncpa [#allocation4], 1 }

</bundles_post_ra>
